<compile_context>
chip_gen: v5e
topology: v5e:2x2
jax: 0.10.0
libtpu: 0.0.40
codegen_flags: <defaults>
</compile_context>

<pallas_src>
import jax
import jax.numpy as jnp
from jax.experimental import pallas as pl
from jax.experimental.pallas import tpu as pltpu


def make_drop_path_mask(key, batch, keep_prob):
    """Per-sample 0/1 keep mask, mirroring torch: floor(keep_prob + rand())."""
    u = jax.random.uniform(key, (batch,), dtype=jnp.float32)
    return jnp.floor(keep_prob + u)  # (B,) of 0.0 / 1.0


def _drop_path_kernel(x_ref, s_ref, o_ref):
    # x_ref/o_ref: (TM, D) VMEM block; s_ref: (TM, 1) pre-scaled {0, 1/keep_prob}
    # already in x.dtype -> native-dtype multiply, no casts in the kernel.
    o_ref[...] = x_ref[...] * s_ref[...]


def _choose_block_rows(rows, d, itemsize, target_bytes=4 << 20):
    """Pick rows-per-block so block_bytes ~= target (multi-MiB), sublane-aligned."""
    sublane = {1: 32, 2: 16}.get(itemsize, 8)
    row_bytes = max(d, 1) * itemsize
    tm = max(target_bytes // row_bytes, 1)
    if tm >= rows:
        return rows  # one block covers everything (full-extent dim is always legal)
    tm = max((tm // sublane) * sublane, sublane)
    return min(tm, rows)


def drop_path_pallas(x, *, drop_prob=0.0, training=False, key=None,
                     block_bytes=4 << 20):
    """DropPath forward. Identity when drop_prob == 0 or not training."""
    if drop_prob == 0.0 or not training:
        return x  # identity fast path, no kernel launch (matches PyTorch)
    if key is None:
        raise ValueError("drop_path_pallas needs a PRNG key in training mode")

    keep_prob = 1.0 - float(drop_prob)
    orig_shape = x.shape
    B = x.shape[0]

    # Canonicalize to 2D (R, D): last dim stays the lane axis.
    if x.ndim == 1:
        x2 = x[:, None]                       # (B, 1)
    elif x.ndim == 2:
        x2 = x
    else:
        x2 = x.reshape(B, -1, x.shape[-1]).reshape(-1, x.shape[-1])
    R, D = x2.shape
    rows_per_sample = R // B

    # Per-sample mask -> per-row pre-scaled multiplier (tiny wrapper work: R elems).
    mask = make_drop_path_mask(key, B, keep_prob)                # (B,) of 0./1.
    scale = (mask * (1.0 / keep_prob)).astype(x.dtype)           # (B,)
    scale_rows = jnp.broadcast_to(scale[:, None],
                                  (B, rows_per_sample)).reshape(R, 1)

    itemsize = jnp.dtype(x.dtype).itemsize
    tm = _choose_block_rows(R, D, itemsize, target_bytes=block_bytes)
    grid = (pl.cdiv(R, tm),)

    cost = pl.CostEstimate(
        flops=R * D,
        transcendentals=0,
        bytes_accessed=2 * R * D * itemsize + R * itemsize,
    )

    out = pl.pallas_call(
        _drop_path_kernel,
        out_shape=jax.ShapeDtypeStruct((R, D), x.dtype),
        grid=grid,
        in_specs=[
            pl.BlockSpec((tm, D), lambda i: (i, 0)),
            pl.BlockSpec((tm, 1), lambda i: (i, 0)),
        ],
        out_specs=pl.BlockSpec((tm, D), lambda i: (i, 0)),
        compiler_params=pltpu.CompilerParams(
            dimension_semantics=("parallel",),
            vmem_limit_bytes=48 << 20,
        ),
        cost_estimate=cost,
    )(x2, scale_rows)
    return out.reshape(orig_shape)


class DropPathPallas:
    """Mirror of the PyTorch `DropPath` module; forward runs the Pallas kernel."""

    def __init__(self, drop_prob=None):
        self.drop_prob = 0.0 if drop_prob is None else float(drop_prob)
        self.training = True

    def __call__(self, x, *, key=None):
        return drop_path_pallas(
            x, drop_prob=self.drop_prob, training=self.training, key=key
        )


if __name__ == "__main__":
    root = jax.random.PRNGKey(0)
    kx, kmask, kx4 = jax.random.split(root, 3)

    # Small ViT-style activations: (batch, tokens, hidden); hidden lane-dense.
    B, N, D = 2, 8, 128
    drop_prob = 0.25
    keep_prob = 1.0 - drop_prob
    x = jax.random.normal(kx, (B, N, D), dtype=jnp.float32)

    mod = DropPathPallas(drop_prob)
    mod.training = True
    out = mod(x, key=kmask)
    out = jax.block_until_ready(out)

    # Pure-JAX reference of the PyTorch forward, using the identical per-sample mask.
    random_tensor = make_drop_path_mask(kmask, B, keep_prob)     # (B,) of 0./1.
    ref = x / keep_prob * random_tensor.reshape(B, 1, 1)

    assert out.shape == x.shape
    assert out.dtype == x.dtype
    assert jnp.allclose(out, ref, rtol=1e-5, atol=1e-6)

    # 4-D input (arbitrary ndim, like PyTorch DropPath handles).
    x4 = jax.random.normal(kx4, (2, 4, 16, 32), dtype=jnp.float32)
    out4 = jax.block_until_ready(drop_path_pallas(
        x4, drop_prob=drop_prob, training=True, key=kmask))
    random_tensor4 = make_drop_path_mask(kmask, 2, keep_prob)
    ref4 = x4 / keep_prob * random_tensor4.reshape(2, 1, 1, 1)
    assert out4.shape == x4.shape
    assert jnp.allclose(out4, ref4, rtol=1e-5, atol=1e-6)

    # Eval mode / drop_prob == 0 are the identity (and launch no kernel).
    mod.training = False
    assert mod(x, key=kmask) is x
    assert drop_path_pallas(x, drop_prob=0.0, training=True, key=kmask) is x

    print("KERNEL_OK")
</pallas_src>

<mosaic_0001>
module attributes {stable_mosaic.version = 11 : i64} {
  func.func @_drop_path_kernel(%arg0: i32, %arg1: memref<16x128xf32, #tpu.memory_space<vmem>>, %arg2: memref<16x1xf32, #tpu.memory_space<vmem>>, %arg3: memref<16x128xf32, #tpu.memory_space<vmem>>) attributes {dimension_semantics = [#tpu.dimension_semantics<parallel>], iteration_bounds = array<i64: 1>, scalar_prefetch = 0 : i64, scratch_operands = 0 : i64, tpu.core_type = #tpu.core_type<tc>, window_params = [{transform_indices = @transform_0, window_bounds = array<i64: 16, 128>}, {transform_indices = @transform_1, window_bounds = array<i64: 16, 1>}, {transform_indices = @transform_2, window_bounds = array<i64: 16, 128>}]} {
    %c0 = arith.constant 0 : index
    %c0_0 = arith.constant 0 : index
    %0 = vector.load %arg1[%c0, %c0_0] : memref<16x128xf32, #tpu.memory_space<vmem>>, vector<16x128xf32>
    %c0_1 = arith.constant 0 : index
    %c0_2 = arith.constant 0 : index
    %1 = vector.load %arg2[%c0_1, %c0_2] : memref<16x1xf32, #tpu.memory_space<vmem>>, vector<16x1xf32>
    %2 = vector.broadcast %1 : vector<16x1xf32> to vector<16x128xf32>
    %3 = arith.mulf %0, %2 : vector<16x128xf32>
    %c0_3 = arith.constant 0 : index
    %c0_4 = arith.constant 0 : index
    %4 = vector.load %arg3[%c0_3, %c0_4] : memref<16x128xf32, #tpu.memory_space<vmem>>, vector<16x128xf32>
    tpu.vector_store %arg3[%c0_3, %c0_4], %3 {strides = array<i32>} : memref<16x128xf32, #tpu.memory_space<vmem>>, vector<16x128xf32>,
    return
  }
  func.func @transform_0(%arg0: i32) -> (i32, i32) {
    %c0_i32 = arith.constant 0 : i32
    %c0_i32_0 = arith.constant 0 : i32
    return %arg0, %c0_i32 : i32, i32
  }
  func.func @transform_1(%arg0: i32) -> (i32, i32) {
    %c0_i32 = arith.constant 0 : i32
    %c0_i32_0 = arith.constant 0 : i32
    return %arg0, %c0_i32 : i32, i32
  }
  func.func @transform_2(%arg0: i32) -> (i32, i32) {
    %c0_i32 = arith.constant 0 : i32
    %c0_i32_0 = arith.constant 0 : i32
    return %arg0, %c0_i32 : i32, i32
  }
}

</mosaic_0001>

<bundles_post_ra>
// kernel: tpu_custom_call.1
= control target key start
LH: loop header
LB: loop body
LE: loop exit
PB: predicated region body
PF: predicated region fallthrough
CT: control target
= control target key end

     0   :  { %s113_s0 = inlined_call_operand.vmem [shape: f32[16,128], index: 0, kind: input, shape index: {}]   ;;  %s114_s1 = inlined_call_operand.vmem [shape: f32[16,1], index: 1, kind: input, shape index: {}]   ;;  %s115_s2 = inlined_call_operand.hbm [shape: f32[16,128], index: 2, kind: output, shape index: {}]  }
   0x1   :  { %v14_v0 = vld [vmem:[%s114_s1] sm:$0xff] }
   0x2   :  { %7 = vsyncpa [#allocation3], 0  ;;  %v79_v1 = vmov 0   ;;  %v15_v2 = vld [vmem:[%s114_s1 + $0x8] sm:$0xff]  ;;  %v12_v3 = vld [vmem:[%s113_s0] sm:$0xff]  ;;  %s80_s15 = smov [#allocation2]  }
   0x3   :  { %52 = vset.pattern.permute.xlu0 %v79_v1  ;;  %s34_s16 = sshll.u32 %s80_s15, 4  ;;  %s36_s19 = sshll.u32 %s115_s2, 4  ;;  %v13_v6 = vld [vmem:[%s113_s0 + $0x8] sm:$0xff]  ;;  %s35_s16 = int_to_ptr.vmem [resolvable:$true] %s34_s16  ;;  %s37_s19 = int_to_ptr.hbm [resolvable:$true] %s36_s19 }
   0x4   :  { %18 = vperm.xlu0 %52, %v14_v0   ;;  %s81_s1 = smov 128   ;;  %s82_s22 = smov 8  }
   0xc   :  { %23 = vperm.xlu0 %52, %v15_v2  }
  0x76   :  { %v19_v4 = vpop.permute.xlu0 %18 }
  0x77   :  { %v26_v5 = vmul.f32 %v19_v4, %v12_v3 }
  0x79   :  { %28 = vst [vmem:[#allocation2] sm:$0xff] %v26_v5 }
  0x7e   :  { %v24_v7 = vpop.permute.xlu0 %23 }
  0x7f   :  { %v27_v8 = vmul.f32 %v24_v7, %v13_v6 }
  0x81   :  { %29 = vst [vmem:[#allocation2 + $0x8] sm:$0xff] %v27_v8 }
  0x82   :  { %42 = dma.vmem_to_hbm [thread:$0]  %s35_s16, 256, %s37_s19, [#allocation3], %s81_s1, %s81_s1, %s82_s22  }
  0x83   :  { %77 = dma.done.wait [#allocation3], 256  }
  0x84   :  { %78 = vsyncadd [#allocation3], 4294967040 }
  0x85   :  { %47 = vsyncpa [#allocation3], 1 }

</bundles_post_ra>
